<compile_context>
chip_gen: v6e
topology: v6e:2x2x1
jax: 0.10.0
libtpu: 0.0.40
codegen_flags: <defaults>
</compile_context>

<pallas_src>
import jax
import jax.numpy as jnp
from jax import lax
from jax.experimental import pallas as pl
from jax.experimental.pallas import tpu as pltpu

BN_EPS = 1e-5


def _basic_block_kernel(x_ref, w1_ref, w2_ref, g1_ref, b1_ref, g2_ref, b2_ref,
                        red_ref, bcast_ref, out_ref):
    """Fused conv1+bn1+relu -> conv2+bn2 -> +identity -> relu.

    Layout: pixels on sublanes, width*channels folded onto the 128-lane axis.

    x_ref     : [N, H, W*C]        f32   input rows (also the residual identity)
    w1_ref    : [3*W*C, W*C]       bf16  stacked banded conv1 weight (3 kh bands)
    w2_ref    : [3*W*C, W*C]       bf16  stacked banded conv2 weight
    g*_ref    : [1, C]             f32   BN scale (gamma)
    b*_ref    : [1, C]             f32   BN shift (beta)
    red_ref   : [W*C, C]           f32   0/1 map: lane (w*C+c) -> channel c
    bcast_ref : [C, W*C]           f32   transpose of red_ref (channel -> lanes)
    out_ref   : [N*H, W*C]         f32   lane-dense output
    """
    N, H, WC = x_ref.shape
    C = g1_ref.shape[-1]
    W = WC // C
    inv_n = 1.0 / float(N * H * W)          # BN element count per channel

    def conv3x3(act, w_ref):
        # act: [N, H, WC] f32.  Height zero-padding = two zero rows fused into
        # a value concat (no scratch, no full-buffer zeroing); width padding
        # and the 3 kw taps are folded into the banded weight.  The 3 kh taps
        # sit side by side on lanes so the conv is ONE matmul with K = 3*WC,
        # cast to bf16 once right before the MXU.
        zrow = jnp.zeros((N, 1, WC), act.dtype)
        pad = jnp.concatenate([zrow, act, zrow], axis=1)             # [N, H+2, WC]
        rows = jnp.concatenate(
            [pad[:, kh:kh + H, :].reshape(N * H, WC) for kh in range(3)],
            axis=-1)                                                 # [N*H, 3*WC]
        return jnp.dot(rows.astype(jnp.bfloat16), w_ref[...],
                       preferred_element_type=jnp.float32)           # [N*H, WC]

    def batchnorm(acc, g_ref, b_ref):
        # Single-pass batch stats (biased variance) over all N*H*W pixels.
        # Lane->channel reduction and channel->lane broadcast are each ONE
        # tiny matmul with the two stat rows stacked on sublanes.
        s = jnp.sum(acc, axis=0, keepdims=True)                      # [1, WC]
        s2 = jnp.sum(acc * acc, axis=0, keepdims=True)               # [1, WC]
        stats = jnp.concatenate([s, s2], axis=0)                     # [2, WC]
        ch = jnp.dot(stats, red_ref[...],
                     preferred_element_type=jnp.float32)             # [2, C]
        mean = ch[0:1, :] * inv_n                                    # [1, C]
        var = ch[1:2, :] * inv_n - mean * mean                       # [1, C]
        scale_c = g_ref[...] * lax.rsqrt(var + BN_EPS)               # [1, C]
        shift_c = b_ref[...] - mean * scale_c                        # [1, C]
        coeff = jnp.dot(jnp.concatenate([scale_c, shift_c], axis=0),
                        bcast_ref[...],
                        preferred_element_type=jnp.float32)          # [2, WC]
        return acc * coeff[0:1, :] + coeff[1:2, :]

    x = x_ref[...]                                                   # [N, H, WC] f32

    # --- stage 1: y = relu(bn1(conv1(x))) ---
    y = jnp.maximum(batchnorm(conv3x3(x, w1_ref), g1_ref, b1_ref), 0.0)

    # --- stage 2: out = relu(bn2(conv2(y)) + identity) ---
    z = batchnorm(conv3x3(y.reshape(N, H, WC), w2_ref), g2_ref, b2_ref)
    out_ref[...] = jnp.maximum(z + x.reshape(N * H, WC), 0.0).astype(out_ref.dtype)


def prepare_basic_block_params(params, width):
    """One-time conversion of PyTorch-style parameters into the kernel layout.

    conv*_w [Cout, Cin, 3, 3] (OIHW) -> stacked banded bf16 weight
    [3*W*Cin, W*Cout]:
      band[kh*W*Cin + w_in*Cin + ci, w_out*Cout + co] = w[co, ci, kh, kw]
      iff w_in == w_out + kw - 1
    (out-of-range taps are absent, which is exactly zero-padding in width).
    """
    W = width
    w1, w2 = params["conv1_w"], params["conv2_w"]
    Cout, Cin = int(w1.shape[0]), int(w1.shape[1])
    assert Cin == Cout, "BasicBlock with downsample=None requires Cin == Cout"
    C = Cout

    def banded(w_oihw):
        w_hwio = jnp.transpose(w_oihw.astype(jnp.float32), (2, 3, 1, 0))  # [3,3,Ci,Co]
        w_in = jnp.arange(W)[:, None]            # [W, 1]
        w_out = jnp.arange(W)[None, :]           # [1, W]
        big = jnp.zeros((3, W, Cin, W, Cout), jnp.float32)
        for kw in range(3):
            mask = (w_in == w_out + (kw - 1)).astype(jnp.float32)         # [W, W]
            big = big + (mask[None, :, None, :, None]
                         * w_hwio[:, kw][:, None, :, None, :])
        return big.reshape(3 * W * Cin, W * Cout).astype(jnp.bfloat16)

    eye = jnp.eye(C, dtype=jnp.float32)
    return {
        "w1": banded(w1),
        "w2": banded(w2),
        "g1": params["bn1_gamma"].reshape(1, C).astype(jnp.float32),
        "b1": params["bn1_beta"].reshape(1, C).astype(jnp.float32),
        "g2": params["bn2_gamma"].reshape(1, C).astype(jnp.float32),
        "b2": params["bn2_beta"].reshape(1, C).astype(jnp.float32),
        "red": jnp.tile(eye, (W, 1)),            # [W*C, C]
        "bcast": jnp.tile(eye, (1, W)),          # [C, W*C]
    }


def basic_block_forward(x_nchw, prepared):
    """BasicBlock.forward (stride=1, downsample=None) via the fused Pallas kernel."""
    N, C, H, W = x_nchw.shape
    WC = W * C
    # NCHW -> lane-dense (N, H, W*C) rows for the kernel (layout plumbing in XLA).
    x_rows = jnp.transpose(x_nchw, (0, 2, 3, 1)).reshape(N, H, WC).astype(jnp.float32)

    out2d = pl.pallas_call(
        _basic_block_kernel,
        out_shape=jax.ShapeDtypeStruct((N * H, WC), jnp.float32),
        in_specs=[pl.BlockSpec(memory_space=pltpu.MemorySpace.VMEM)] * 9,
        out_specs=pl.BlockSpec(memory_space=pltpu.MemorySpace.VMEM),
    )(x_rows, prepared["w1"], prepared["w2"],
      prepared["g1"], prepared["b1"], prepared["g2"], prepared["b2"],
      prepared["red"], prepared["bcast"])

    # Lane-dense kernel output -> NCHW.
    return jnp.transpose(out2d.reshape(N, H, W, C), (0, 3, 1, 2))


def _ref_forward(x_nchw, params):
    """Pure-JAX f32 reference mirroring the PyTorch forward (NCHW)."""
    def conv(x, w_oihw):
        return lax.conv_general_dilated(
            x, w_oihw, window_strides=(1, 1), padding=((1, 1), (1, 1)),
            dimension_numbers=("NCHW", "OIHW", "NCHW"))

    def bn(x, g, b):
        mean = jnp.mean(x, axis=(0, 2, 3), keepdims=True)
        var = jnp.mean((x - mean) ** 2, axis=(0, 2, 3), keepdims=True)
        return ((x - mean) * lax.rsqrt(var + BN_EPS)
                * g.reshape(1, -1, 1, 1) + b.reshape(1, -1, 1, 1))

    identity = x_nchw
    y = jnp.maximum(bn(conv(x_nchw, params["conv1_w"]),
                       params["bn1_gamma"], params["bn1_beta"]), 0.0)
    y = bn(conv(y, params["conv2_w"]), params["bn2_gamma"], params["bn2_beta"])
    return jnp.maximum(y + identity, 0.0)


if __name__ == "__main__":
    # Small shapes; in_channels == out_channels since downsample=None.
    # C=8, W=16 -> W*C = 128 (exactly one lane tile).
    N, C, H, W = 2, 8, 16, 16

    key = jax.random.PRNGKey(0)
    k_x, k_w1, k_w2, k_g1, k_b1, k_g2, k_b2 = jax.random.split(key, 7)

    x = jax.random.normal(k_x, (N, C, H, W), jnp.float32)

    params = {
        "conv1_w": jax.random.normal(k_w1, (C, C, 3, 3), jnp.float32) * 0.1,  # OIHW
        "conv2_w": jax.random.normal(k_w2, (C, C, 3, 3), jnp.float32) * 0.1,  # OIHW
        "bn1_gamma": jax.random.uniform(k_g1, (C,), jnp.float32, 0.5, 1.5),
        "bn1_beta": jax.random.normal(k_b1, (C,), jnp.float32) * 0.1,
        "bn2_gamma": jax.random.uniform(k_g2, (C,), jnp.float32, 0.5, 1.5),
        "bn2_beta": jax.random.normal(k_b2, (C,), jnp.float32) * 0.1,
    }

    prepared = prepare_basic_block_params(params, width=W)   # one-time weight prep
    fwd = jax.jit(basic_block_forward)

    out = jax.block_until_ready(fwd(x, prepared))
    ref = jax.block_until_ready(_ref_forward(x, params))

    assert out.shape == (N, C, H, W), out.shape
    # Tolerance reflects bf16 MXU operands (f32 accumulation) vs. a pure-f32
    # reference across the two chained convolutions.
    max_err = float(jnp.max(jnp.abs(out - ref)))
    assert jnp.allclose(out, ref, atol=3e-2, rtol=3e-2), max_err

    print("KERNEL_OK")
</pallas_src>

<mosaic_0001>
module attributes {stable_mosaic.version = 11 : i64} {
  func.func @_basic_block_kernel(%arg0: memref<2x16x128xf32, #tpu.memory_space<vmem>>, %arg1: memref<384x128xbf16, #tpu.memory_space<vmem>>, %arg2: memref<384x128xbf16, #tpu.memory_space<vmem>>, %arg3: memref<1x8xf32, #tpu.memory_space<vmem>>, %arg4: memref<1x8xf32, #tpu.memory_space<vmem>>, %arg5: memref<1x8xf32, #tpu.memory_space<vmem>>, %arg6: memref<1x8xf32, #tpu.memory_space<vmem>>, %arg7: memref<128x8xf32, #tpu.memory_space<vmem>>, %arg8: memref<8x128xf32, #tpu.memory_space<vmem>>, %arg9: memref<32x128xf32, #tpu.memory_space<vmem>>) attributes {dimension_semantics = [], scalar_prefetch = 0 : i64, scratch_operands = 0 : i64, tpu.core_type = #tpu.core_type<tc>} {
    %c0 = arith.constant 0 : index
    %c0_0 = arith.constant 0 : index
    %c0_1 = arith.constant 0 : index
    %0 = vector.load %arg0[%c0, %c0_0, %c0_1] : memref<2x16x128xf32, #tpu.memory_space<vmem>>, vector<2x16x128xf32>
    %cst = arith.constant 0.000000e+00 : f32
    %1 = vector.broadcast %cst : f32 to vector<2x1x128xf32>
    %2 = tpu.concatenate %1, %0, %1 in 1 : vector<2x1x128xf32>, vector<2x16x128xf32>, vector<2x1x128xf32> -> vector<2x18x128xf32>
    %3 = vector.extract_strided_slice %2 {offsets = [0, 0, 0], sizes = [2, 16, 128], strides = [1, 1, 1]} : vector<2x18x128xf32> to vector<2x16x128xf32>
    %4 = vector.shape_cast %3 : vector<2x16x128xf32> to vector<32x128xf32>
    %5 = vector.extract_strided_slice %2 {offsets = [0, 1, 0], sizes = [2, 16, 128], strides = [1, 1, 1]} : vector<2x18x128xf32> to vector<2x16x128xf32>
    %6 = vector.shape_cast %5 : vector<2x16x128xf32> to vector<32x128xf32>
    %7 = vector.extract_strided_slice %2 {offsets = [0, 2, 0], sizes = [2, 16, 128], strides = [1, 1, 1]} : vector<2x18x128xf32> to vector<2x16x128xf32>
    %8 = vector.shape_cast %7 : vector<2x16x128xf32> to vector<32x128xf32>
    %9 = tpu.concatenate %4, %6, %8 in 1 : vector<32x128xf32>, vector<32x128xf32>, vector<32x128xf32> -> vector<32x384xf32>
    %10 = arith.truncf %9 : vector<32x384xf32> to vector<32x384xbf16>
    %c0_2 = arith.constant 0 : index
    %c0_3 = arith.constant 0 : index
    %11 = vector.load %arg1[%c0_2, %c0_3] : memref<384x128xbf16, #tpu.memory_space<vmem>>, vector<384x128xbf16>
    %cst_4 = arith.constant dense<0.000000e+00> : vector<32x128xf32>
    %12 = tpu.matmul %10, %11, %cst_4 {dimension_numbers = #tpu.dot_dimension_numbers<[1], [0], [0], [1], [0, 0, 1, 1], [], []>} : vector<32x384xbf16>, vector<384x128xbf16>, vector<32x128xf32> -> vector<32x128xf32>
    %cst_5 = arith.constant dense<0.000000e+00> : vector<128xf32>
    %13 = vector.multi_reduction <add>, %12, %cst_5 [0] : vector<32x128xf32> to vector<128xf32>
    %14 = vector.shape_cast %13 : vector<128xf32> to vector<1x128xf32>
    %15 = arith.mulf %12, %12 : vector<32x128xf32>
    %cst_6 = arith.constant dense<0.000000e+00> : vector<128xf32>
    %16 = vector.multi_reduction <add>, %15, %cst_6 [0] : vector<32x128xf32> to vector<128xf32>
    %17 = vector.shape_cast %16 : vector<128xf32> to vector<1x128xf32>
    %18 = tpu.concatenate %14, %17 in 0 : vector<1x128xf32>, vector<1x128xf32> -> vector<2x128xf32>
    %c0_7 = arith.constant 0 : index
    %c0_8 = arith.constant 0 : index
    %19 = vector.load %arg7[%c0_7, %c0_8] : memref<128x8xf32, #tpu.memory_space<vmem>>, vector<128x8xf32>
    %cst_9 = arith.constant dense<0.000000e+00> : vector<2x8xf32>
    %20 = tpu.matmul %18, %19, %cst_9 {dimension_numbers = #tpu.dot_dimension_numbers<[1], [0], [0], [1], [0, 0, 1, 1], [], []>} : vector<2x128xf32>, vector<128x8xf32>, vector<2x8xf32> -> vector<2x8xf32>
    %21 = vector.extract_strided_slice %20 {offsets = [0, 0], sizes = [1, 8], strides = [1, 1]} : vector<2x8xf32> to vector<1x8xf32>
    %cst_10 = arith.constant 0.001953125 : f32
    %22 = vector.broadcast %cst_10 : f32 to vector<1x8xf32>
    %23 = arith.mulf %21, %22 : vector<1x8xf32>
    %24 = vector.extract_strided_slice %20 {offsets = [1, 0], sizes = [1, 8], strides = [1, 1]} : vector<2x8xf32> to vector<1x8xf32>
    %cst_11 = arith.constant 0.001953125 : f32
    %25 = vector.broadcast %cst_11 : f32 to vector<1x8xf32>
    %26 = arith.mulf %24, %25 : vector<1x8xf32>
    %27 = arith.mulf %23, %23 : vector<1x8xf32>
    %28 = arith.subf %26, %27 : vector<1x8xf32>
    %c0_12 = arith.constant 0 : index
    %c0_13 = arith.constant 0 : index
    %29 = vector.load %arg3[%c0_12, %c0_13] : memref<1x8xf32, #tpu.memory_space<vmem>>, vector<1x8xf32>
    %cst_14 = arith.constant 9.99999974E-6 : f32
    %30 = vector.broadcast %cst_14 : f32 to vector<1x8xf32>
    %31 = arith.addf %28, %30 : vector<1x8xf32>
    %32 = math.rsqrt %31 : vector<1x8xf32>
    %33 = arith.mulf %29, %32 : vector<1x8xf32>
    %c0_15 = arith.constant 0 : index
    %c0_16 = arith.constant 0 : index
    %34 = vector.load %arg4[%c0_15, %c0_16] : memref<1x8xf32, #tpu.memory_space<vmem>>, vector<1x8xf32>
    %35 = arith.mulf %23, %33 : vector<1x8xf32>
    %36 = arith.subf %34, %35 : vector<1x8xf32>
    %37 = tpu.concatenate %33, %36 in 0 : vector<1x8xf32>, vector<1x8xf32> -> vector<2x8xf32>
    %c0_17 = arith.constant 0 : index
    %c0_18 = arith.constant 0 : index
    %38 = vector.load %arg8[%c0_17, %c0_18] : memref<8x128xf32, #tpu.memory_space<vmem>>, vector<8x128xf32>
    %cst_19 = arith.constant dense<0.000000e+00> : vector<2x128xf32>
    %39 = tpu.matmul %37, %38, %cst_19 {dimension_numbers = #tpu.dot_dimension_numbers<[1], [0], [0], [1], [0, 0, 1, 1], [], []>} : vector<2x8xf32>, vector<8x128xf32>, vector<2x128xf32> -> vector<2x128xf32>
    %40 = vector.extract_strided_slice %39 {offsets = [0, 0], sizes = [1, 128], strides = [1, 1]} : vector<2x128xf32> to vector<1x128xf32>
    %41 = vector.broadcast %40 : vector<1x128xf32> to vector<32x128xf32>
    %42 = arith.mulf %12, %41 : vector<32x128xf32>
    %43 = vector.extract_strided_slice %39 {offsets = [1, 0], sizes = [1, 128], strides = [1, 1]} : vector<2x128xf32> to vector<1x128xf32>
    %44 = vector.broadcast %43 : vector<1x128xf32> to vector<32x128xf32>
    %45 = arith.addf %42, %44 : vector<32x128xf32>
    %cst_20 = arith.constant 0.000000e+00 : f32
    %46 = vector.broadcast %cst_20 : f32 to vector<32x128xf32>
    %47 = arith.maximumf %45, %46 : vector<32x128xf32>
    %48 = vector.shape_cast %47 : vector<32x128xf32> to vector<2x16x128xf32>
    %cst_21 = arith.constant 0.000000e+00 : f32
    %49 = vector.broadcast %cst_21 : f32 to vector<2x1x128xf32>
    %50 = tpu.concatenate %49, %48, %49 in 1 : vector<2x1x128xf32>, vector<2x16x128xf32>, vector<2x1x128xf32> -> vector<2x18x128xf32>
    %51 = vector.extract_strided_slice %50 {offsets = [0, 0, 0], sizes = [2, 16, 128], strides = [1, 1, 1]} : vector<2x18x128xf32> to vector<2x16x128xf32>
    %52 = vector.shape_cast %51 : vector<2x16x128xf32> to vector<32x128xf32>
    %53 = vector.extract_strided_slice %50 {offsets = [0, 1, 0], sizes = [2, 16, 128], strides = [1, 1, 1]} : vector<2x18x128xf32> to vector<2x16x128xf32>
    %54 = vector.shape_cast %53 : vector<2x16x128xf32> to vector<32x128xf32>
    %55 = vector.extract_strided_slice %50 {offsets = [0, 2, 0], sizes = [2, 16, 128], strides = [1, 1, 1]} : vector<2x18x128xf32> to vector<2x16x128xf32>
    %56 = vector.shape_cast %55 : vector<2x16x128xf32> to vector<32x128xf32>
    %57 = tpu.concatenate %52, %54, %56 in 1 : vector<32x128xf32>, vector<32x128xf32>, vector<32x128xf32> -> vector<32x384xf32>
    %58 = arith.truncf %57 : vector<32x384xf32> to vector<32x384xbf16>
    %c0_22 = arith.constant 0 : index
    %c0_23 = arith.constant 0 : index
    %59 = vector.load %arg2[%c0_22, %c0_23] : memref<384x128xbf16, #tpu.memory_space<vmem>>, vector<384x128xbf16>
    %cst_24 = arith.constant dense<0.000000e+00> : vector<32x128xf32>
    %60 = tpu.matmul %58, %59, %cst_24 {dimension_numbers = #tpu.dot_dimension_numbers<[1], [0], [0], [1], [0, 0, 1, 1], [], []>} : vector<32x384xbf16>, vector<384x128xbf16>, vector<32x128xf32> -> vector<32x128xf32>
    %cst_25 = arith.constant dense<0.000000e+00> : vector<128xf32>
    %61 = vector.multi_reduction <add>, %60, %cst_25 [0] : vector<32x128xf32> to vector<128xf32>
    %62 = vector.shape_cast %61 : vector<128xf32> to vector<1x128xf32>
    %63 = arith.mulf %60, %60 : vector<32x128xf32>
    %cst_26 = arith.constant dense<0.000000e+00> : vector<128xf32>
    %64 = vector.multi_reduction <add>, %63, %cst_26 [0] : vector<32x128xf32> to vector<128xf32>
    %65 = vector.shape_cast %64 : vector<128xf32> to vector<1x128xf32>
    %66 = tpu.concatenate %62, %65 in 0 : vector<1x128xf32>, vector<1x128xf32> -> vector<2x128xf32>
    %c0_27 = arith.constant 0 : index
    %c0_28 = arith.constant 0 : index
    %67 = vector.load %arg7[%c0_27, %c0_28] : memref<128x8xf32, #tpu.memory_space<vmem>>, vector<128x8xf32>
    %cst_29 = arith.constant dense<0.000000e+00> : vector<2x8xf32>
    %68 = tpu.matmul %66, %67, %cst_29 {dimension_numbers = #tpu.dot_dimension_numbers<[1], [0], [0], [1], [0, 0, 1, 1], [], []>} : vector<2x128xf32>, vector<128x8xf32>, vector<2x8xf32> -> vector<2x8xf32>
    %69 = vector.extract_strided_slice %68 {offsets = [0, 0], sizes = [1, 8], strides = [1, 1]} : vector<2x8xf32> to vector<1x8xf32>
    %cst_30 = arith.constant 0.001953125 : f32
    %70 = vector.broadcast %cst_30 : f32 to vector<1x8xf32>
    %71 = arith.mulf %69, %70 : vector<1x8xf32>
    %72 = vector.extract_strided_slice %68 {offsets = [1, 0], sizes = [1, 8], strides = [1, 1]} : vector<2x8xf32> to vector<1x8xf32>
    %cst_31 = arith.constant 0.001953125 : f32
    %73 = vector.broadcast %cst_31 : f32 to vector<1x8xf32>
    %74 = arith.mulf %72, %73 : vector<1x8xf32>
    %75 = arith.mulf %71, %71 : vector<1x8xf32>
    %76 = arith.subf %74, %75 : vector<1x8xf32>
    %c0_32 = arith.constant 0 : index
    %c0_33 = arith.constant 0 : index
    %77 = vector.load %arg5[%c0_32, %c0_33] : memref<1x8xf32, #tpu.memory_space<vmem>>, vector<1x8xf32>
    %cst_34 = arith.constant 9.99999974E-6 : f32
    %78 = vector.broadcast %cst_34 : f32 to vector<1x8xf32>
    %79 = arith.addf %76, %78 : vector<1x8xf32>
    %80 = math.rsqrt %79 : vector<1x8xf32>
    %81 = arith.mulf %77, %80 : vector<1x8xf32>
    %c0_35 = arith.constant 0 : index
    %c0_36 = arith.constant 0 : index
    %82 = vector.load %arg6[%c0_35, %c0_36] : memref<1x8xf32, #tpu.memory_space<vmem>>, vector<1x8xf32>
    %83 = arith.mulf %71, %81 : vector<1x8xf32>
    %84 = arith.subf %82, %83 : vector<1x8xf32>
    %85 = tpu.concatenate %81, %84 in 0 : vector<1x8xf32>, vector<1x8xf32> -> vector<2x8xf32>
    %c0_37 = arith.constant 0 : index
    %c0_38 = arith.constant 0 : index
    %86 = vector.load %arg8[%c0_37, %c0_38] : memref<8x128xf32, #tpu.memory_space<vmem>>, vector<8x128xf32>
    %cst_39 = arith.constant dense<0.000000e+00> : vector<2x128xf32>
    %87 = tpu.matmul %85, %86, %cst_39 {dimension_numbers = #tpu.dot_dimension_numbers<[1], [0], [0], [1], [0, 0, 1, 1], [], []>} : vector<2x8xf32>, vector<8x128xf32>, vector<2x128xf32> -> vector<2x128xf32>
    %88 = vector.extract_strided_slice %87 {offsets = [0, 0], sizes = [1, 128], strides = [1, 1]} : vector<2x128xf32> to vector<1x128xf32>
    %89 = vector.broadcast %88 : vector<1x128xf32> to vector<32x128xf32>
    %90 = arith.mulf %60, %89 : vector<32x128xf32>
    %91 = vector.extract_strided_slice %87 {offsets = [1, 0], sizes = [1, 128], strides = [1, 1]} : vector<2x128xf32> to vector<1x128xf32>
    %92 = vector.broadcast %91 : vector<1x128xf32> to vector<32x128xf32>
    %93 = arith.addf %90, %92 : vector<32x128xf32>
    %94 = vector.shape_cast %0 : vector<2x16x128xf32> to vector<32x128xf32>
    %95 = arith.addf %93, %94 : vector<32x128xf32>
    %cst_40 = arith.constant 0.000000e+00 : f32
    %96 = vector.broadcast %cst_40 : f32 to vector<32x128xf32>
    %97 = arith.maximumf %95, %96 : vector<32x128xf32>
    %c0_41 = arith.constant 0 : index
    %c0_42 = arith.constant 0 : index
    %98 = vector.load %arg9[%c0_41, %c0_42] : memref<32x128xf32, #tpu.memory_space<vmem>>, vector<32x128xf32>
    tpu.vector_store %arg9[%c0_41, %c0_42], %97 {strides = array<i32>} : memref<32x128xf32, #tpu.memory_space<vmem>>, vector<32x128xf32>,
    return
  }
}

</mosaic_0001>

<bundles_post_ra>
// kernel: basic_block_forward.1
= control target key start
LH: loop header
LB: loop body
LE: loop exit
PB: predicated region body
PF: predicated region fallthrough
CT: control target
= control target key end

     0   :  { %vm41_vm0 = vcmask 1040384   ;;  %vm62_vm1 = vcmask 1046528   ;;  %vm77_vm2 = vcmask 1045504   ;;  %vm1568_vm4 = vmmov 1   ;;  %s2077_s1 = inlined_call_operand.vmem [shape: bf16[384,128], index: 1, kind: input, shape index: {}]   ;;  %s2078_s0 = inlined_call_operand.vmem [shape: f32[2,16,128], index: 0, kind: input, shape index: {}]   ;;  %s2079_s7 = inlined_call_operand.vmem [shape: f32[128,8], index: 7, kind: input, shape index: {}]   ;;  %s2080_s8 = inlined_call_operand.vmem [shape: f32[8,128], index: 8, kind: input, shape index: {}]   ;;  %s2081_s2 = inlined_call_operand.vmem [shape: bf16[384,128], index: 2, kind: input, shape index: {}]   ;;  %s2082_s3 = inlined_call_operand.vmem [shape: f32[1,8], index: 3, kind: input, shape index: {}]   ;;  %s2083_s4 = inlined_call_operand.vmem [shape: f32[1,8], index: 4, kind: input, shape index: {}]   ;;  %s2084_s5 = inlined_call_operand.vmem [shape: f32[1,8], index: 5, kind: input, shape index: {}]   ;;  %s2085_s6 = inlined_call_operand.vmem [shape: f32[1,8], index: 6, kind: input, shape index: {}]   ;;  %s2086_s9 = inlined_call_operand.vmem [shape: f32[32,128], index: 9, kind: output, shape index: {}]  }
   0x1   :  { %v1516_v0 = vld [vmem:[%s2077_s1 + $0x78] sm:$0xff]   ;;  %v1519_v3 = vld [vmem:[%s2077_s1 + $0x70] sm:$0xff]   ;;  %v1522_v6 = vld [vmem:[%s2077_s1 + $0x68] sm:$0xff]   ;;  %vm1570_vm6 = vmmov 0   ;;  %vm535_vm7 = vcmask 64512  }
   0x2   :  { %v1517_v1 = vld [vmem:[%s2077_s1 + $0xb8] sm:$0xff]   ;;  %1278 = vmatprep.subr.bf16.mxu0 %v1516_v0  ;;  %v1520_v4 = vld [vmem:[%s2077_s1 + $0xb0] sm:$0xff]   ;;  %v1523_v7 = vld [vmem:[%s2077_s1 + $0xa8] sm:$0xff]  }
   0x3   :  { %v1518_v2 = vld [vmem:[%s2077_s1 + $0x38] sm:$0xff]   ;;  %1392 = vmatprep.subr.bf16.mxu1 %v1517_v1  ;;  %v1521_v5 = vld [vmem:[%s2077_s1 + $0x30] sm:$0xff]   ;;  %v1524_v8 = vld [vmem:[%s2077_s1 + $0x28] sm:$0xff]  }
   0x4   :  { %1279 = vmatpush3.bf16.msra.mxu0 %v1518_v2  ;;  %1393 = vmatpush3.bf16.msra.mxu1 %v1517_v1  ;;  %v1525_v9 = vld [vmem:[%s2077_s1 + $0x60] sm:$0xff]   ;;  %v1528_v12 = vld [vmem:[%s2077_s1 + $0x58] sm:$0xff]   ;;  %v1531_v15 = vld [vmem:[%s2077_s1 + $0x50] sm:$0xff]   ;;  %v1569_v2 = vmov 0.0  }
   0x5   :  { %1280 = vmatprep.subr.bf16.mxu0 %v1519_v3  ;;  %1394 = vmatprep.subr.bf16.mxu1 %v1520_v4  ;;  %v1526_v10 = vld [vmem:[%s2077_s1 + $0xa0] sm:$0xff]   ;;  %v1529_v13 = vld [vmem:[%s2077_s1 + $0x98] sm:$0xff]   ;;  %v1532_v16 = vld [vmem:[%s2077_s1 + $0x90] sm:$0xff]  }
   0x6   :  { %v1527_v11 = vld [vmem:[%s2077_s1 + $0x20] sm:$0xff]   ;;  %v1530_v14 = vld [vmem:[%s2077_s1 + $0x18] sm:$0xff]   ;;  %v1533_v17 = vld [vmem:[%s2077_s1 + $0x10] sm:$0xff]  }
   0x7   :  { %v1534_v18 = vld [vmem:[%s2077_s1 + $0x48] sm:$0xff]   ;;  %v1537_v21 = vld [vmem:[%s2077_s1 + $0x40] sm:$0xff]   ;;  %v1706_v27 = vld [vmem:[%s2078_s0 + $0x10] sm:$0xff] }
   0x8   :  { %1281 = vmatpush3.bf16.msra.mxu0 %v1521_v5  ;;  %1395 = vmatpush3.bf16.msra.mxu1 %v1520_v4  ;;  %v1535_v19 = vld [vmem:[%s2077_s1 + $0x88] sm:$0xff]   ;;  %v1691_v22 = vld [vmem:[%s2078_s0] sm:$0xff]  ;;  %v1711_v28 = vld [vmem:[%s2078_s0 + $0x18] sm:$0xff]  ;;  %v45_v29 = vrot.slane %v1706_v27, 7 }
   0x9   :  { %1282 = vmatprep.subr.bf16.mxu0 %v1522_v6  ;;  %1396 = vmatprep.subr.bf16.mxu1 %v1523_v7  ;;  %v1536_v20 = vld [vmem:[%s2077_s1 + $0x8] sm:$0xff]   ;;  %v1538_v24 = vld [vmem:[%s2077_s1 + $0x80] sm:$0xff]   ;;  %v42_v25 = vrot.slane %v1691_v22, 7  ;;  %v46_v30 = vrot.slane %v1711_v28, 7  ;;  %vm1722_vm3 = vmneg %vm41_vm0 }
   0xa   :  { %v1696_v23 = vld [vmem:[%s2078_s0 + $0x8] sm:$0xff]  ;;  %v1539_v34 = vld [vmem:[%s2077_s1] sm:$0xff]   ;;  %v55_v46 = vsel %vm41_vm0, 0.0, %v45_v29  ;;  %vm1735_vm5 = vmpackc.low %vm1568_vm4, %vm1722_vm3 }
   0xb   :  { %v43_v26 = vrot.slane %v1696_v23, 7  ;;  %v54_v32 = vsel %vm41_vm0, 0.0, %v42_v25  ;;  %v47_v43 = vsel %vm41_vm0, %v45_v29, %v46_v30  ;;  %v57_v47 = vsel %vm41_vm0, %v46_v30, 0.0  ;;  %v1751_v3 = vld [vmem:[%s2079_s7 + $0x78] sm:$0xff]  ;;  %v1759_v4 = vld [vmem:[%s2079_s7 + $0x70] sm:$0xff]  ;;  %v1766_v5 = vld [vmem:[%s2079_s7 + $0x68] sm:$0xff] }
   0xc   :  { %1283 = vmatpush3.bf16.msra.mxu0 %v1524_v8  ;;  %1397 = vmatpush3.bf16.msra.mxu1 %v1523_v7  ;;  %v63_v35 = vrot.slane %v54_v32, 1  ;;  %v78_v38 = vrot.slane %v54_v32, 2  ;;  %v83_v51 = vrot.slane %v55_v46, 2  ;;  %v84_v54 = vrot.slane %v47_v43, 2  ;;  %v1773_v6 = vld [vmem:[%s2079_s7 + $0x60] sm:$0xff]  ;;  %v1780_v7 = vld [vmem:[%s2079_s7 + $0x58] sm:$0xff] }
   0xd   :  { %1284 = vmatprep.subr.bf16.mxu0 %v1525_v9  ;;  %1398 = vmatprep.subr.bf16.mxu1 %v1526_v10  ;;  %v44_v31 = vsel %vm41_vm0, %v42_v25, %v43_v26  ;;  %v56_v33 = vsel %vm41_vm0, %v43_v26, 0.0  ;;  %v86_v55 = vrot.slane %v57_v47, 2  ;;  %v68_v56 = vrot.slane %v55_v46, 1  ;;  %v1787_v8 = vld [vmem:[%s2079_s7 + $0x50] sm:$0xff]  ;;  %v1794_v9 = vld [vmem:[%s2079_s7 + $0x48] sm:$0xff] }
   0xe   :  { %v64_v36 = vrot.slane %v44_v31, 1  ;;  %v66_v37 = vrot.slane %v56_v33, 1  ;;  %v79_v39 = vrot.slane %v44_v31, 2  ;;  %v81_v40 = vrot.slane %v56_v33, 2 }
   0xf   :  { %v1238_v42 = vpack.c.bf16 %v44_v31, %v42_v25  ;;  %v69_v57 = vrot.slane %v47_v43, 1  ;;  %v71_v58 = vrot.slane %v57_v47, 1  ;;  %v85_v59 = vsel %vm77_vm2, %v83_v51, %v84_v54 }
  0x10   :  { %1285 = vmatpush3.bf16.msra.mxu0 %v1527_v11  ;;  %1399 = vmatpush3.bf16.msra.mxu1 %v1526_v10  ;;  %v65_v44 = vsel %vm62_vm1, %v63_v35, %v64_v36  ;;  %v67_v45 = vsel %vm62_vm1, %v64_v36, %v66_v37  ;;  %v80_v49 = vsel %vm77_vm2, %v78_v38, %v79_v39  ;;  %v1801_v10 = vld [vmem:[%s2079_s7 + $0x40] sm:$0xff]  ;;  %v1808_v11 = vld [vmem:[%s2079_s7 + $0x38] sm:$0xff] }
  0x11   :  { %1286 = vmatprep.subr.bf16.mxu0 %v1528_v12  ;;  %1400 = vmatprep.subr.bf16.mxu1 %v1529_v13  ;;  %v93_v48 = vpack.c.bf16 %v67_v45, %v65_v44  ;;  %v82_v50 = vsel %vm77_vm2, %v79_v39, %v81_v40  ;;  %v87_v60 = vsel %vm77_vm2, %v84_v54, %v86_v55  ;;  %v1815_v12 = vld [vmem:[%s2079_s7 + $0x30] sm:$0xff] }
  0x12   :  { %v94_v52 = vpack.c.bf16 %v82_v50, %v80_v49  ;;  %v97_v61 = vpack.c.bf16 %v87_v60, %v85_v59  ;;  %v70_v62 = vsel %vm62_vm1, %v68_v56, %v69_v57  ;;  %v72_v63 = vsel %vm62_vm1, %v69_v57, %v71_v58 }
  0x13   :  { %322 = vmatprep.mubr.bf16.mxu0 %v93_v48  ;;  %v96_v0 = vpack.c.bf16 %v72_v63, %v70_v62  ;;  %v1242_v1 = vpack.c.bf16 %v47_v43, %v45_v29 }
  0x14   :  { %1287 = vmatpush3.bf16.msra.mxu0 %v1530_v14  ;;  %1401 = vmatpush3.bf16.msra.mxu1 %v1529_v13  ;;  %v1822_v13 = vld [vmem:[%s2079_s7 + $0x28] sm:$0xff]  ;;  %v1828_v14 = vld [vmem:[%s2079_s7 + $0x20] sm:$0xff] }
  0x15   :  { %1288 = vmatprep.subr.bf16.mxu0 %v1531_v15  ;;  %1402 = vmatprep.subr.bf16.mxu1 %v1532_v16  ;;  %v1834_v15 = vld [vmem:[%s2079_s7 + $0x18] sm:$0xff] }
  0x16   :  { %1408 = vmatprep.mubr.bf16.mxu1 %v94_v52 }
  0x18   :  { %1289 = vmatpush3.bf16.msra.mxu0 %v1533_v17  ;;  %1403 = vmatpush3.bf16.msra.mxu1 %v1532_v16  ;;  %v1845_v16 = vld [vmem:[%s2079_s7 + $0x10] sm:$0xff]  ;;  %v1852_v17 = vld [vmem:[%s2079_s7 + $0x8] sm:$0xff] }
  0x19   :  { %1290 = vmatprep.subr.bf16.mxu0 %v1534_v18  ;;  %1404 = vmatprep.subr.bf16.mxu1 %v1535_v19  ;;  %v1859_v18 = vld [vmem:[%s2079_s7] sm:$0xff] }
  0x1c   :  { %1291 = vmatpush3.bf16.msra.mxu0 %v1536_v20  ;;  %1405 = vmatpush3.bf16.msra.mxu1 %v1535_v19 }
  0x1d   :  { %1292 = vmatprep.subr.bf16.mxu0 %v1537_v21  ;;  %1406 = vmatprep.subr.bf16.mxu1 %v1538_v24 }
  0x20   :  { %1293 = vmatpush3.bf16.msra.mxu0 %v1539_v34  ;;  %1407 = vmatpush3.bf16.msra.mxu1 %v1538_v24 }
  0x21   :  { %1412 = vmatprep.subr.mxu0 %v1569_v2  ;;  %1447 = vmatprep.subr.mxu1 %v1569_v2 }
  0x23   :  { %1239 = vmatmul.mubr.msk.bf16.vlgmr.msra.gmra.mxu0 %vm1735_vm5, %v1238_v42  ;;  %1409 = vmatmul.mubr.bf16.vlgmr.msra.gmra.mxu1 %v97_v61 }
  0x24   :  { %330 = vmatprep.mubr.bf16.mxu0 %v96_v0  ;;  %1413 = vmatpush3.msra.mxu0 %v1751_v3 }
  0x25   :  { %1414 = vmatprep.subr.mxu0 %v1569_v2  ;;  %1449 = vmatprep.mubr.msk.f32.mxu1 %vm1570_vm6, %v1569_v2 }
  0x26   :  { %1415 = vmatpush3.msra.mxu0 %v1759_v4 }
  0x27   :  { %1416 = vmatprep.subr.mxu0 %v1569_v2 }
  0x28   :  { %1417 = vmatpush3.msra.mxu0 %v1766_v5 }
  0x29   :  { %1418 = vmatprep.subr.mxu0 %v1569_v2 }
  0x2a   :  { %1419 = vmatpush3.msra.mxu0 %v1773_v6 }
  0x2b   :  { %1243 = vmatmul.mubr.msk.bf16.gmra.mxu0 %vm1735_vm5, %v1242_v1  ;;  %1420 = vmatprep.subr.mxu0 %v1569_v2 }
  0x2c   :  { %1421 = vmatpush3.msra.mxu0 %v1780_v7  ;;  %1444 = vmatprep.mubr.msk.f32.mxu0 %vm1570_vm6, %v1569_v2 }
  0x2d   :  { %1422 = vmatprep.subr.mxu0 %v1569_v2 }
  0x2e   :  { %1423 = vmatpush3.msra.mxu0 %v1787_v8 }
  0x2f   :  { %1424 = vmatprep.subr.mxu0 %v1569_v2 }
  0x30   :  { %1425 = vmatpush3.msra.mxu0 %v1794_v9 }
  0x31   :  { %1426 = vmatprep.subr.mxu0 %v1569_v2 }
  0x32   :  { %1427 = vmatpush3.msra.mxu0 %v1801_v10 }
  0x33   :  { %1428 = vmatprep.subr.mxu0 %v1569_v2 }
  0x34   :  { %1429 = vmatpush3.msra.mxu0 %v1808_v11 }
  0x35   :  { %1430 = vmatprep.subr.mxu0 %v1569_v2 }
  0x36   :  { %1431 = vmatpush3.msra.mxu0 %v1815_v12 }
  0x37   :  { %1432 = vmatprep.subr.mxu0 %v1569_v2 }
  0x38   :  { %1433 = vmatpush3.msra.mxu0 %v1822_v13 }
  0x39   :  { %1434 = vmatprep.subr.mxu0 %v1569_v2 }
  0x3a   :  { %1435 = vmatpush3.msra.mxu0 %v1828_v14 }
  0x3b   :  { %1436 = vmatprep.subr.mxu0 %v1569_v2 }
  0x3c   :  { %1437 = vmatpush3.msra.mxu0 %v1834_v15 }
  0x3d   :  { %1438 = vmatprep.subr.mxu0 %v1569_v2 }
  0x3e   :  { %1439 = vmatpush3.msra.mxu0 %v1845_v16 }
  0x3f   :  { %1440 = vmatprep.subr.mxu0 %v1569_v2 }
  0x40   :  { %1441 = vmatpush3.msra.mxu0 %v1852_v17 }
  0x41   :  { %1442 = vmatprep.subr.mxu0 %v1569_v2 }
  0x42   :  { %1443 = vmatpush3.msra.mxu0 %v1859_v18 }
  0xe3   :  { %v1294_v19 = vpop.f32.mrf.mxu0  ;;  %v1410_v20 = vpop.f32.mrf.mxu1 }
  0xe5   :  { %v1295_v21 = vpop.f32.mrf.mxu0  ;;  %v373_v24 = vpop.f32.mrf.mxu1 }
  0xe6   :  { %v1296_v30 = vadd.f32 %v1295_v21, %v1294_v19  ;;  %v1540_v21 = vld [vmem:[%s2081_s2 + $0x78] sm:$0xff]  }
  0xe7   :  { %v1297_v25 = vpop.f32.mrf.mxu0  ;;  %v1411_v26 = vpop.f32.mrf.mxu1 }
  0xe8   :  { %v1866_v36 = vadd.f32 %v1296_v30, %v373_v24  ;;  %v1541_v24 = vld [vmem:[%s2081_s2 + $0xb8] sm:$0xff]  }
  0xe9   :  { %v1298_v29 = vpop.f32.mrf.mxu0  ;;  %v376_v32 = vpop.f32.mrf.mxu1  ;;  %1452 = vmatprep.subr.bf16.mxu0 %v1541_v24 }
  0xea   :  { %v1299_v31 = vadd.f32 %v1298_v29, %v1297_v25  ;;  %v397_v42 = vmul.f32 %v1866_v36, %v1866_v36  ;;  %v1544_v25 = vld [vmem:[%s2081_s2 + $0xb0] sm:$0xff]   ;;  %v1550_v29 = vld [vmem:[%s2081_s2 + $0xa0] sm:$0xff]  }
  0xeb   :  { %v1300_v33 = vpop.f32.mrf.mxu0 }
  0xec   :  { %v1864_v34 = vadd.f32 %v1299_v31, %v376_v32 }
  0xed   :  { %v1301_v35 = vpop.f32.mrf.mxu0 }
  0xee   :  { %v1302_v37 = vadd.f32 %v1301_v35, %v1300_v33  ;;  %v398_v39 = vmul.f32 %v1864_v34, %v1864_v34  ;;  %v388_v43 = vadd.f32 %v1864_v34, %v1866_v36 }
  0xef   :  { %v1303_v38 = vpop.f32.mrf.mxu0 }
  0xf0   :  { %v1870_v40 = vadd.f32 %v1410_v20, %v1302_v37  ;;  %v401_v46 = vadd.f32 %v398_v39, %v397_v42  ;;  %v1888_v20 = vld [vmem:[%s2080_s8] sm:$0xff]  ;;  %v1571_v39 = vmov 1966171168   ;;  %v510_v42 = vlaneseq }
  0xf1   :  { %v1304_v41 = vpop.f32.mrf.mxu0  ;;  %1448 = vmatpush3.msra.mxu1 %v1888_v20 }
  0xf2   :  { %v399_v44 = vmul.f32 %v1870_v40, %v1870_v40  ;;  %v1305_v45 = vadd.f32 %v1304_v41, %v1303_v38  ;;  %v389_v47 = vadd.f32 %v388_v43, %v1870_v40  ;;  %1335 = vmatprep.subr.bf16.mxu1 %v1540_v21  ;;  %v508_v41 = vunpack.c.l.s4 %v1571_v39  ;;  %v1552_v21 = vld [vmem:[%s2081_s2 + $0x58] sm:$0xff]  }
  0xf4   :  { %v1879_v48 = vadd.f32 %v1411_v26, %v1305_v45  ;;  %v402_v49 = vadd.f32 %v401_v46, %v399_v44  ;;  %v1547_v26 = vld [vmem:[%s2081_s2 + $0xa8] sm:$0xff]   ;;  %v509_v43 = vunpack.c.0.s8 %v508_v41  ;;  %v1906_v44 = vshrl.u32 %v510_v42, 7 }
  0xf6   :  { %v390_v50 = vadd.f32 %v389_v47, %v1879_v48  ;;  %v400_v51 = vmul.f32 %v1879_v48, %v1879_v48  ;;  %v1909_v45 = vsub.s32 %v509_v43, %v1906_v44  ;;  %v619_v39 = vsub.s32 1, %v1906_v44 }
  0xf8   :  { %v391_v52 = vrot.slane %v390_v50, 4  ;;  %v403_v54 = vadd.f32 %v402_v49, %v400_v51 }
  0xfa   :  { %v392_v55 = vadd.f32 %v391_v52, %v390_v50  ;;  %v404_v56 = vrot.slane %v403_v54, 4  ;;  %v503_v50 = vld [vmem:[%s2082_s3] sm:$0x1] }
  0xfc   :  { %v393_v57 = vrot.slane %v392_v55, 2  ;;  %v405_v58 = vadd.f32 %v404_v56, %v403_v54  ;;  %v524_v54 = vld [vmem:[%s2083_s4] sm:$0x1]  ;;  %v1920_v56 = vsub.s32 0, %v1906_v44 }
  0xfe   :  { %v394_v59 = vadd.f32 %v393_v57, %v392_v55  ;;  %v406_v60 = vrot.slane %v405_v58, 2 }
 0x100   :  { %v395_v61 = vrot.slane %v394_v59, 1  ;;  %v407_v62 = vadd.f32 %v406_v60, %v405_v58  ;;  %v1543_v60 = vld [vmem:[%s2081_s2 + $0x70] sm:$0xff]  }
 0x102   :  { %v408_v63 = vrot.slane %v407_v62, 1  ;;  %v396_v0 = vadd.f32 %v395_v61, %v394_v59  ;;  %v1542_v59 = vld [vmem:[%s2081_s2 + $0x38] sm:$0xff]  }
 0x104   :  { %v409_v1 = vadd.f32 %v408_v63, %v407_v62  ;;  %v1545_v62 = vld [vmem:[%s2081_s2 + $0x30] sm:$0xff]   ;;  %v1546_v63 = vld [vmem:[%s2081_s2 + $0x68] sm:$0xff]  }
 0x106   :  { %v410_v19 = vsel %vm41_vm0, %v396_v0, %v409_v1  ;;  %v1548_v0 = vld [vmem:[%s2081_s2 + $0x28] sm:$0xff]   ;;  %v1549_v1 = vld [vmem:[%s2081_s2 + $0x60] sm:$0xff]  }
 0x107   :  { %1445 = vmatmul.mubr.f32.vlgmr.msra.gmra.mxu0 %v410_v19  ;;  %v1551_v19 = vld [vmem:[%s2081_s2 + $0x20] sm:$0xff]  }
 0x108   :  { %1453 = vmatpush3.bf16.msra.mxu0 %v1541_v24  ;;  %v1553_v24 = vld [vmem:[%s2081_s2 + $0x98] sm:$0xff]  }
 0x109   :  { %1454 = vmatprep.subr.bf16.mxu0 %v1544_v25 }
 0x10c   :  { %1455 = vmatpush3.bf16.msra.mxu0 %v1544_v25  ;;  %v1554_v25 = vld [vmem:[%s2081_s2 + $0x18] sm:$0xff]  }
 0x10d   :  { %1456 = vmatprep.subr.bf16.mxu0 %v1547_v26 }
 0x110   :  { %1457 = vmatpush3.bf16.msra.mxu0 %v1547_v26  ;;  %v1555_v26 = vld [vmem:[%s2081_s2 + $0x50] sm:$0xff]  }
 0x111   :  { %1458 = vmatprep.subr.bf16.mxu0 %v1550_v29 }
 0x114   :  { %1459 = vmatpush3.bf16.msra.mxu0 %v1550_v29  ;;  %v1556_v29 = vld [vmem:[%s2081_s2 + $0x90] sm:$0xff]  }
 0x115   :  { %1460 = vmatprep.subr.bf16.mxu0 %v1553_v24 }
 0x118   :  { %1461 = vmatpush3.bf16.msra.mxu0 %v1553_v24 }
 0x119   :  { %1462 = vmatprep.subr.bf16.mxu0 %v1556_v29 }
 0x11c   :  { %1463 = vmatpush3.bf16.msra.mxu0 %v1556_v29 }
 0x1c7   :  { %v493_v30 = vpop.f32.mrf.mxu0 }
 0x1c8   :  { %v497_v31 = vmul.f32 0.001953125, %v493_v30  ;;  %v1557_v30 = vld [vmem:[%s2081_s2 + $0x10] sm:$0xff]  }
 0x1c9   :  { %v1446_v32 = vpop.f32.mrf.mxu0 }
 0x1ca   :  { %v498_v33 = vmul.f32 %v497_v31, %v497_v31  ;;  %v1559_v32 = vld [vmem:[%s2081_s2 + $0x88] sm:$0xff]  }
 0x1cb   :  { %1464 = vmatprep.subr.bf16.mxu0 %v1559_v32 }
 0x1cc   :  { %v500_v35 = vrot.slane %v498_v33, 7  ;;  %v1560_v33 = vld [vmem:[%s2081_s2 + $0x8] sm:$0xff]   ;;  %1465 = vmatpush3.bf16.msra.mxu0 %v1559_v32 }
 0x1ce   :  { %v502_v37 = vsub.f32 %v497_v31, %v500_v35  ;;  %v1561_v35 = vld [vmem:[%s2081_s2 + $0x40] sm:$0xff]  }
 0x1d0   :  { %v504_v38 = vadd.f32 1e-05, %v502_v37  ;;  %v1562_v37 = vld [vmem:[%s2081_s2 + $0x80] sm:$0xff]  }
 0x1d1   :  { %1466 = vmatprep.subr.bf16.mxu0 %v1562_v37 }
 0x1d2   :  { %1564 = vrsqrt.f32 %v504_v38  ;;  %v1563_v38 = vld [vmem:[%s2081_s2] sm:$0xff]   ;;  %1467 = vmatpush3.bf16.msra.mxu0 %v1562_v37 }
 0x1d3   :  { %1507 = vmatprep.subr.mxu0 %v1569_v2 }
 0x1df   :  { %v1565_v46 = vpop.eup %1564 }
 0x1e0   :  { %v513_v47 = vrot.slane %v1565_v46, %v1909_v45 }
 0x1e2   :  { %v514_v49 = vcombine.high %v513_v47, %v513_v47 }
 0x1e4   :  { %v521_v51 = vrot.slane %v514_v49, %v1909_v45 }
 0x1e6   :  { %v523_v52 = vmul.f32 %v521_v51, %v503_v50 }
 0x1e8   :  { %v525_v55 = vmul.f32 %v523_v52, %v497_v31  ;;  %v1558_v31 = vld [vmem:[%s2081_s2 + $0x48] sm:$0xff]  }
 0x1ea   :  { %v526_v57 = vsub.f32 %v524_v54, %v525_v55 }
 0x1ec   :  { %v531_v58 = vrot.slane %v526_v57, %v1920_v56 }
 0x1ee   :  { %v533_v61 = vsel %vm41_vm0, %v523_v52, %v531_v58 }
 0x1ef   :  { %1450 = vmatmul.mubr.msk.f32.vlgmr.msra.gmra.mxu1 %vm535_vm7, %v533_v61 }
 0x1f0   :  { %1336 = vmatpush3.bf16.msra.mxu1 %v1542_v59 }
 0x1f1   :  { %1337 = vmatprep.subr.bf16.mxu1 %v1543_v60 }
 0x1f4   :  { %1338 = vmatpush3.bf16.msra.mxu1 %v1545_v62 }
 0x1f5   :  { %1339 = vmatprep.subr.bf16.mxu1 %v1546_v63 }
 0x1f8   :  { %1340 = vmatpush3.bf16.msra.mxu1 %v1548_v0 }
 0x1f9   :  { %1341 = vmatprep.subr.bf16.mxu1 %v1549_v1 }
 0x1fc   :  { %1342 = vmatpush3.bf16.msra.mxu1 %v1551_v19 }
 0x1fd   :  { %1343 = vmatprep.subr.bf16.mxu1 %v1552_v21 }
 0x200   :  { %1344 = vmatpush3.bf16.msra.mxu1 %v1554_v25 }
 0x201   :  { %1345 = vmatprep.subr.bf16.mxu1 %v1555_v26 }
 0x204   :  { %1346 = vmatpush3.bf16.msra.mxu1 %v1557_v30 }
 0x205   :  { %1347 = vmatprep.subr.bf16.mxu1 %v1558_v31 }
 0x208   :  { %1348 = vmatpush3.bf16.msra.mxu1 %v1560_v33 }
 0x209   :  { %1349 = vmatprep.subr.bf16.mxu1 %v1561_v35 }
 0x20c   :  { %1350 = vmatpush3.bf16.msra.mxu1 %v1563_v38 }
 0x20d   :  { %1472 = vmatprep.subr.mxu1 %v1569_v2 }
 0x2af   :  { %v605_v41 = vpop.f32.mrf.mxu1 }
 0x2b0   :  { %v612_v42 = vrot.slane %v605_v41, %v1920_v56  ;;  %v620_v43 = vrot.slane %v605_v41, %v619_v39 }
 0x2b1   :  { %v1451_v46 = vpop.f32.mrf.mxu1 }
 0x2b2   :  { %v613_v47 = vmul.f32 %v612_v42, %v1866_v36  ;;  %v614_v49 = vmul.f32 %v612_v42, %v1864_v34  ;;  %v615_v50 = vmul.f32 %v612_v42, %v1870_v40  ;;  %v616_v51 = vmul.f32 %v612_v42, %v1879_v48 }
 0x2b4   :  { %v621_v52 = vadd.f32 %v620_v43, %v613_v47  ;;  %v622_v54 = vadd.f32 %v620_v43, %v614_v49  ;;  %v623_v55 = vadd.f32 %v620_v43, %v615_v50  ;;  %v624_v57 = vadd.f32 %v620_v43, %v616_v51 }
 0x2b6   :  { %v625_v58 = vmax.f32 %v621_v52, 0.0  ;;  %v626_v59 = vmax.f32 %v622_v54, 0.0  ;;  %v627_v60 = vmax.f32 %v623_v55, 0.0  ;;  %v628_v61 = vmax.f32 %v624_v57, 0.0 }
 0x2b8   :  { %v633_v62 = vrot.slane %v625_v58, 7  ;;  %v634_v63 = vrot.slane %v626_v59, 7  ;;  %v636_v0 = vrot.slane %v627_v60, 7  ;;  %v637_v1 = vrot.slane %v628_v61, 7 }
 0x2ba   :  { %v648_v36 = vsel %vm41_vm0, %v637_v1, 0.0  ;;  %v635_v34 = vsel %vm41_vm0, %v633_v62, %v634_v63  ;;  %v645_v40 = vsel %vm41_vm0, 0.0, %v633_v62  ;;  %v647_v48 = vsel %vm41_vm0, %v634_v63, 0.0 }
 0x2bb   :  { %v653_v19 = vrot.slane %v645_v40, 1  ;;  %v654_v21 = vrot.slane %v635_v34, 1  ;;  %v656_v24 = vrot.slane %v647_v48, 1  ;;  %v667_v25 = vrot.slane %v645_v40, 2 }
 0x2bc   :  { %v668_v26 = vrot.slane %v635_v34, 2  ;;  %v670_v29 = vrot.slane %v647_v48, 2  ;;  %v1271_v30 = vpack.c.bf16 %v635_v34, %v633_v62  ;;  %v638_v31 = vsel %vm41_vm0, %v636_v0, %v637_v1 }
 0x2bd   :  { %v655_v32 = vsel %vm62_vm1, %v653_v19, %v654_v21  ;;  %v657_v33 = vsel %vm62_vm1, %v654_v21, %v656_v24  ;;  %v646_v35 = vsel %vm41_vm0, 0.0, %v636_v0  ;;  %v673_v37 = vrot.slane %v638_v31, 2 }
 0x2be   :  { %v682_v38 = vpack.c.bf16 %v657_v33, %v655_v32  ;;  %v669_v41 = vsel %vm77_vm2, %v667_v25, %v668_v26  ;;  %v671_v42 = vsel %vm77_vm2, %v668_v26, %v670_v29  ;;  %v672_v43 = vrot.slane %v646_v35, 2 }
 0x2bf   :  { %v683_v46 = vpack.c.bf16 %v671_v42, %v669_v41  ;;  %v675_v47 = vrot.slane %v648_v36, 2  ;;  %v658_v49 = vrot.slane %v646_v35, 1  ;;  %v659_v50 = vrot.slane %v638_v31, 1 }
 0x2c0   :  { %911 = vmatprep.mubr.bf16.mxu1 %v682_v38  ;;  %v674_v51 = vsel %vm77_vm2, %v672_v43, %v673_v37  ;;  %v661_v52 = vrot.slane %v648_v36, 1  ;;  %v1275_v60 = vpack.c.bf16 %v638_v31, %v636_v0 }
 0x2c1   :  { %1468 = vmatprep.mubr.bf16.mxu0 %v683_v46  ;;  %1272 = vmatmul.mubr.msk.bf16.vlgmr.msra.gmra.mxu1 %vm1735_vm5, %v1271_v30  ;;  %v676_v54 = vsel %vm77_vm2, %v673_v37, %v675_v47  ;;  %v660_v55 = vsel %vm62_vm1, %v658_v49, %v659_v50 }
 0x2c2   :  { %v686_v57 = vpack.c.bf16 %v676_v54, %v674_v51  ;;  %v662_v58 = vsel %vm62_vm1, %v659_v50, %v661_v52  ;;  %1473 = vmatpush3.msra.mxu1 %v1751_v3 }
 0x2c3   :  { %v685_v59 = vpack.c.bf16 %v662_v58, %v660_v55  ;;  %1474 = vmatprep.subr.mxu1 %v1569_v2  ;;  %v1076_v58 = vld [vmem:[%s2084_s5] sm:$0x1] }
 0x2c4   :  { %1469 = vmatmul.mubr.bf16.vlgmr.msra.gmra.mxu0 %v686_v57  ;;  %1475 = vmatpush3.msra.mxu1 %v1759_v4 }
 0x2c5   :  { %919 = vmatprep.mubr.bf16.mxu1 %v685_v59  ;;  %1476 = vmatprep.subr.mxu1 %v1569_v2 }
 0x2c6   :  { %1477 = vmatpush3.msra.mxu1 %v1766_v5  ;;  %1508 = vmatpush3.msra.mxu0 %v1888_v20 }
 0x2c7   :  { %1478 = vmatprep.subr.mxu1 %v1569_v2  ;;  %1509 = vmatprep.mubr.msk.f32.mxu0 %vm1570_vm6, %v1569_v2 }
 0x2c8   :  { %1479 = vmatpush3.msra.mxu1 %v1773_v6 }
 0x2c9   :  { %1276 = vmatmul.mubr.msk.bf16.gmra.mxu1 %vm1735_vm5, %v1275_v60  ;;  %1480 = vmatprep.subr.mxu1 %v1569_v2 }
 0x2ca   :  { %1481 = vmatpush3.msra.mxu1 %v1780_v7  ;;  %1504 = vmatprep.mubr.msk.f32.mxu1 %vm1570_vm6, %v1569_v2 }
 0x2cb   :  { %1482 = vmatprep.subr.mxu1 %v1569_v2 }
 0x2cc   :  { %1483 = vmatpush3.msra.mxu1 %v1787_v8 }
 0x2cd   :  { %1484 = vmatprep.subr.mxu1 %v1569_v2 }
 0x2ce   :  { %1485 = vmatpush3.msra.mxu1 %v1794_v9 }
 0x2cf   :  { %1486 = vmatprep.subr.mxu1 %v1569_v2 }
 0x2d0   :  { %1487 = vmatpush3.msra.mxu1 %v1801_v10 }
 0x2d1   :  { %1488 = vmatprep.subr.mxu1 %v1569_v2 }
 0x2d2   :  { %1489 = vmatpush3.msra.mxu1 %v1808_v11 }
 0x2d3   :  { %1490 = vmatprep.subr.mxu1 %v1569_v2 }
 0x2d4   :  { %1491 = vmatpush3.msra.mxu1 %v1815_v12 }
 0x2d5   :  { %1492 = vmatprep.subr.mxu1 %v1569_v2 }
 0x2d6   :  { %1493 = vmatpush3.msra.mxu1 %v1822_v13 }
 0x2d7   :  { %1494 = vmatprep.subr.mxu1 %v1569_v2 }
 0x2d8   :  { %1495 = vmatpush3.msra.mxu1 %v1828_v14 }
 0x2d9   :  { %1496 = vmatprep.subr.mxu1 %v1569_v2 }
 0x2da   :  { %1497 = vmatpush3.msra.mxu1 %v1834_v15 }
 0x2db   :  { %1498 = vmatprep.subr.mxu1 %v1569_v2 }
 0x2dc   :  { %1499 = vmatpush3.msra.mxu1 %v1845_v16 }
 0x2dd   :  { %1500 = vmatprep.subr.mxu1 %v1569_v2 }
 0x2de   :  { %1501 = vmatpush3.msra.mxu1 %v1852_v17 }
 0x2df   :  { %1502 = vmatprep.subr.mxu1 %v1569_v2 }
 0x2e0   :  { %1503 = vmatpush3.msra.mxu1 %v1859_v18 }
 0x381   :  { %v1351_v53 = vpop.f32.mrf.mxu1 }
 0x383   :  { %v1352_v3 = vpop.f32.mrf.mxu1 }
 0x384   :  { %v1470_v4 = vpop.f32.mrf.mxu0  ;;  %v1353_v8 = vadd.f32 %v1352_v3, %v1351_v53  ;;  %v1097_v53 = vld [vmem:[%s2085_s6] sm:$0x1] }
 0x385   :  { %v1354_v5 = vpop.f32.mrf.mxu1 }
 0x386   :  { %v962_v6 = vpop.f32.mrf.mxu0 }
 0x387   :  { %v1355_v7 = vpop.f32.mrf.mxu1  ;;  %v963_v15 = vadd.f32 %v1353_v8, %v962_v6 }
 0x388   :  { %v1471_v9 = vpop.f32.mrf.mxu0  ;;  %v1356_v10 = vadd.f32 %v1355_v7, %v1354_v5 }
 0x389   :  { %v1357_v11 = vpop.f32.mrf.mxu1  ;;  %v986_v18 = vmul.f32 %v963_v15, %v963_v15 }
 0x38a   :  { %v965_v12 = vpop.f32.mrf.mxu0 }
 0x38b   :  { %v966_v13 = vadd.f32 %v1356_v10, %v965_v12  ;;  %v1358_v14 = vpop.f32.mrf.mxu1 }
 0x38c   :  { %v1359_v16 = vadd.f32 %v1358_v14, %v1357_v11 }
 0x38d   :  { %v1360_v17 = vpop.f32.mrf.mxu1  ;;  %v987_v20 = vmul.f32 %v966_v13, %v966_v13  ;;  %v977_v62 = vadd.f32 %v966_v13, %v963_v15 }
 0x38e   :  { %v971_v2 = vadd.f32 %v1470_v4, %v1359_v16 }
 0x38f   :  { %v1361_v61 = vpop.f32.mrf.mxu1  ;;  %v990_v1 = vadd.f32 %v987_v20, %v986_v18 }
 0x390   :  { %v988_v63 = vmul.f32 %v971_v2, %v971_v2  ;;  %v1362_v0 = vadd.f32 %v1361_v61, %v1360_v17  ;;  %v978_v36 = vadd.f32 %v977_v62, %v971_v2 }
 0x392   :  { %v974_v34 = vadd.f32 %v1471_v9, %v1362_v0  ;;  %v991_v40 = vadd.f32 %v990_v1, %v988_v63 }
 0x394   :  { %v979_v48 = vadd.f32 %v978_v36, %v974_v34  ;;  %v989_v19 = vmul.f32 %v974_v34, %v974_v34 }
 0x396   :  { %v980_v21 = vrot.slane %v979_v48, 4  ;;  %v992_v24 = vadd.f32 %v991_v40, %v989_v19 }
 0x398   :  { %v981_v25 = vadd.f32 %v980_v21, %v979_v48  ;;  %v993_v26 = vrot.slane %v992_v24, 4 }
 0x39a   :  { %v982_v29 = vrot.slane %v981_v25, 2  ;;  %v994_v30 = vadd.f32 %v993_v26, %v992_v24 }
 0x39c   :  { %v983_v31 = vadd.f32 %v982_v29, %v981_v25  ;;  %v995_v32 = vrot.slane %v994_v30, 2 }
 0x39e   :  { %v984_v33 = vrot.slane %v983_v31, 1  ;;  %v996_v35 = vadd.f32 %v995_v32, %v994_v30 }
 0x3a0   :  { %v997_v37 = vrot.slane %v996_v35, 1  ;;  %v985_v38 = vadd.f32 %v984_v33, %v983_v31 }
 0x3a2   :  { %v998_v41 = vadd.f32 %v997_v37, %v996_v35 }
 0x3a4   :  { %v999_v42 = vsel %vm41_vm0, %v985_v38, %v998_v41 }
 0x3a5   :  { %1505 = vmatmul.mubr.f32.vlgmr.msra.gmra.mxu1 %v999_v42 }
 0x465   :  { %v1066_v43 = vpop.f32.mrf.mxu1 }
 0x466   :  { %v1070_v46 = vmul.f32 0.001953125, %v1066_v43 }
 0x467   :  { %v1506_v47 = vpop.f32.mrf.mxu1 }
 0x468   :  { %v1071_v49 = vmul.f32 %v1070_v46, %v1070_v46 }
 0x46a   :  { %v1073_v50 = vrot.slane %v1071_v49, 7 }
 0x46c   :  { %v1075_v51 = vsub.f32 %v1070_v46, %v1073_v50 }
 0x46e   :  { %v1077_v52 = vadd.f32 1e-05, %v1075_v51 }
 0x470   :  { %1566 = vrsqrt.f32 %v1077_v52 }
 0x47d   :  { %v1567_v54 = vpop.eup %1566 }
 0x47e   :  { %v1086_v55 = vrot.slane %v1567_v54, %v1909_v45 }
 0x480   :  { %v1087_v57 = vcombine.high %v1086_v55, %v1086_v55 }
 0x482   :  { %v1094_v59 = vrot.slane %v1087_v57, %v1909_v45 }
 0x484   :  { %v1096_v60 = vmul.f32 %v1094_v59, %v1076_v58 }
 0x486   :  { %v1098_v3 = vmul.f32 %v1096_v60, %v1070_v46 }
 0x488   :  { %v1099_v4 = vsub.f32 %v1097_v53, %v1098_v3 }
 0x48a   :  { %v1104_v5 = vrot.slane %v1099_v4, %v1920_v56 }
 0x48c   :  { %v1106_v6 = vsel %vm41_vm0, %v1096_v60, %v1104_v5 }
 0x48d   :  { %1510 = vmatmul.mubr.msk.f32.vlgmr.msra.gmra.mxu0 %vm535_vm7, %v1106_v6 }
 0x54d   :  { %v1176_v7 = vpop.f32.mrf.mxu0 }
 0x54e   :  { %v1183_v8 = vrot.slane %v1176_v7, %v1920_v56  ;;  %v1191_v9 = vrot.slane %v1176_v7, %v619_v39 }
 0x54f   :  { %v1511_v45 = vpop.f32.mrf.mxu0 }
 0x550   :  { %v1184_v10 = vmul.f32 %v1183_v8, %v963_v15  ;;  %v1185_v11 = vmul.f32 %v1183_v8, %v966_v13  ;;  %v1186_v12 = vmul.f32 %v1183_v8, %v971_v2  ;;  %v1187_v14 = vmul.f32 %v1183_v8, %v974_v34 }
 0x552   :  { %v1192_v16 = vadd.f32 %v1191_v9, %v1184_v10  ;;  %v1193_v17 = vadd.f32 %v1191_v9, %v1185_v11  ;;  %v1194_v20 = vadd.f32 %v1191_v9, %v1186_v12  ;;  %v1195_v61 = vadd.f32 %v1191_v9, %v1187_v14 }
 0x554   :  { %v1196_v18 = vadd.f32 %v1192_v16, %v1691_v22  ;;  %v1197_v62 = vadd.f32 %v1193_v17, %v1696_v23  ;;  %v1198_v63 = vadd.f32 %v1194_v20, %v1706_v27  ;;  %v1199_v56 = vadd.f32 %v1195_v61, %v1711_v28 }
 0x556   :  { %v1200_v0 = vmax.f32 %v1196_v18, 0.0  ;;  %v1201_v44 = vmax.f32 %v1197_v62, 0.0  ;;  %v1202_v39 = vmax.f32 %v1198_v63, 0.0  ;;  %v1203_v1 = vmax.f32 %v1199_v56, 0.0 }
 0x558   :  { %1204 = vst [vmem:[%s2086_s9] sm:$0xff] %v1200_v0  ;;  %1205 = vst [vmem:[%s2086_s9 + $0x8] sm:$0xff] %v1201_v44 }
 0x559   :  { %1206 = vst [vmem:[%s2086_s9 + $0x10] sm:$0xff] %v1202_v39  ;;  %1207 = vst [vmem:[%s2086_s9 + $0x18] sm:$0xff] %v1203_v1 }

</bundles_post_ra>
